<compile_context>
chip_gen: v6e
topology: v6e:2x2x1
jax: 0.10.0
libtpu: 0.0.40
codegen_flags: <defaults>
</compile_context>

<pallas_src>
import jax
import jax.numpy as jnp
from jax.experimental import pallas as pl
from jax.experimental.pallas import tpu as pltpu

LOG_STD_MAX = 2.0
LOG_STD_MIN = -20.0


def _round_up(x: int, m: int) -> int:
    return ((x + m - 1) // m) * m


def _cdiv(a: int, b: int) -> int:
    return (a + b - 1) // b


def _policy_kernel(obs_ref, w1_ref, w2_ref, w3_ref, b1_ref, b2_ref, b3_ref, mean_ref):
    """One batch tile of the 3-layer tanh MLP.

    obs_ref: (TB, D)   in obs dtype (f32 or bf16)
    w1_ref : (D, H)    compute dtype (bf16 or f32), VMEM-resident
    w2_ref : (H, H)
    w3_ref : (H, Ap)   output-dim zero-padded to a 128 multiple (done once at load time)
    b*_ref : (1, H)/(1, H)/(1, Ap) in f32
    mean_ref: (TB, Ap) f32, lane-dense
    """
    w_dtype = w1_ref.dtype

    x = obs_ref[...].astype(w_dtype)                               # (TB, D)

    # Layer 1: Linear + ReLU (f32 accumulation on the MXU, f32 elementwise).
    h1 = jnp.dot(x, w1_ref[...], preferred_element_type=jnp.float32) + b1_ref[...]
    h1 = jnp.maximum(h1, 0.0).astype(w_dtype)

    # Layer 2: Linear + ReLU.
    h2 = jnp.dot(h1, w2_ref[...], preferred_element_type=jnp.float32) + b2_ref[...]
    h2 = jnp.maximum(h2, 0.0).astype(w_dtype)

    # Output layer: Linear + Tanh (output_activation_fn=nn.Tanh).
    # Padded output columns hit zero weights + zero bias -> tanh(0) = 0 exactly.
    out = jnp.dot(h2, w3_ref[...], preferred_element_type=jnp.float32) + b3_ref[...]
    mean_ref[...] = jnp.tanh(out)


def prepare_params(params, compute_dtype=jnp.bfloat16):
    """One-time packing of GaussianPolicy parameters for the kernel.

    Weights stored in `compute_dtype` (bf16 recommended: native MXU dtype on v5e/v6e/v7x,
    halves HBM/VMEM traffic; the kernel always accumulates in f32). Biases stay f32.
    Only w3/b3 are zero-padded on the act dim so the kernel output is lane-dense.
    std = exp(clamp(log_std)) is batch-independent -> computed here, once.
    """
    w1, b1, w2, b2, w3, b3, log_std = params
    H = w1.shape[1]
    A = w3.shape[1]
    Ap = _round_up(A, 128)
    f32 = jnp.float32

    w3p = jnp.zeros((w3.shape[0], Ap), compute_dtype).at[:, :A].set(w3.astype(compute_dtype))
    b3p = jnp.zeros((1, Ap), f32).at[0, :A].set(b3.astype(f32))
    std = jnp.exp(jnp.clip(log_std.astype(f32), LOG_STD_MIN, LOG_STD_MAX))

    return {
        "w1": w1.astype(compute_dtype), "b1": b1.astype(f32).reshape(1, H),
        "w2": w2.astype(compute_dtype), "b2": b2.astype(f32).reshape(1, H),
        "w3": w3p, "b3": b3p,
        "std": std, "act_dim": A,
    }


def gaussian_policy_forward(obs, prepared, *, max_batch_tile=1024):
    """Returns (mean, std) of the Normal produced by GaussianPolicy.forward.

    mean: (B, act_dim) from the Pallas kernel.
    std:  (act_dim,)   precomputed in prepare_params (batch independent).
    """
    B, D = obs.shape
    H = prepared["w1"].shape[1]
    Ap = prepared["w3"].shape[1]
    A = prepared["act_dim"]

    # ---- Batch tiling -------------------------------------------------------------------
    # TB derived from cdiv so padding waste is <= 8 rows per grid step; grid kept >= 2 for
    # medium/large batches so a dual-TensorCore chip (v7x) can shard the "parallel" axis.
    B8 = _round_up(B, 8)
    n_steps = max(1, _cdiv(B8, max_batch_tile))
    if n_steps == 1 and B8 >= 256:
        n_steps = 2
    TB = _round_up(_cdiv(B8, n_steps), 8)
    Bp = TB * n_steps

    obs_p = obs if Bp == B else jnp.zeros((Bp, D), obs.dtype).at[:B].set(obs)

    # ---- Cost / memory hints ------------------------------------------------------------
    w_bytes = prepared["w1"].dtype.itemsize
    bytes_accessed = int(
        Bp * D * obs_p.dtype.itemsize                 # obs read
        + (D * H + H * H + H * Ap) * w_bytes          # weights (read once)
        + (2 * H + Ap) * 4                            # biases
        + Bp * Ap * 4                                 # mean write
    )
    cost = pl.CostEstimate(
        flops=int(2 * B * (D * H + H * H + H * A)),
        transcendentals=int(B * A),
        bytes_accessed=bytes_accessed,
    )

    mean_p = pl.pallas_call(
        _policy_kernel,
        out_shape=jax.ShapeDtypeStruct((Bp, Ap), jnp.float32),
        grid=(n_steps,),
        in_specs=[
            pl.BlockSpec((TB, D), lambda i: (i, 0)),    # obs tile (pipelined)
            pl.BlockSpec((D, H), lambda i: (0, 0)),     # w1 (fetched once, VMEM-resident)
            pl.BlockSpec((H, H), lambda i: (0, 0)),     # w2
            pl.BlockSpec((H, Ap), lambda i: (0, 0)),    # w3 (act-dim padded)
            pl.BlockSpec((1, H), lambda i: (0, 0)),     # b1
            pl.BlockSpec((1, H), lambda i: (0, 0)),     # b2
            pl.BlockSpec((1, Ap), lambda i: (0, 0)),    # b3 (act-dim padded)
        ],
        out_specs=pl.BlockSpec((TB, Ap), lambda i: (i, 0)),   # lane-dense mean tile
        compiler_params=pltpu.CompilerParams(
            dimension_semantics=("parallel",),
            vmem_limit_bytes=32 * 1024 * 1024,
        ),
        cost_estimate=cost,
    )(obs_p, prepared["w1"], prepared["w2"], prepared["w3"],
      prepared["b1"], prepared["b2"], prepared["b3"])

    mean = mean_p[:B, :A]
    return mean, prepared["std"]


def init_params(key, state_dim, hidden_dim, act_dim):
    """Shapes matching GaussianPolicy.__init__
    (PyTorch Linear default init: U(-1/sqrt(fan_in), 1/sqrt(fan_in))).
    Weights stored transposed vs. torch (in, out) so the kernel does y = x @ W + b."""
    ks = jax.random.split(key, 6)

    def linear(kw, kb, fan_in, fan_out):
        bound = 1.0 / jnp.sqrt(float(fan_in))
        w = jax.random.uniform(kw, (fan_in, fan_out), jnp.float32, -bound, bound)
        b = jax.random.uniform(kb, (fan_out,), jnp.float32, -bound, bound)
        return w, b

    w1, b1 = linear(ks[0], ks[1], state_dim, hidden_dim)
    w2, b2 = linear(ks[2], ks[3], hidden_dim, hidden_dim)
    w3, b3 = linear(ks[4], ks[5], hidden_dim, act_dim)
    log_std = jnp.zeros((act_dim,), jnp.float32)  # nn.Parameter(torch.zeros(act_dim))
    return (w1, b1, w2, b2, w3, b3, log_std)


def reference_forward(obs, params, compute_dtype=jnp.float32):
    """Pure-JAX reference mirroring the kernel's (optional) low-precision storage:
    inputs/weights/activations quantized to compute_dtype, all math in f32."""
    w1, b1, w2, b2, w3, b3, log_std = params
    f32 = jnp.float32

    def q(v):
        return v.astype(compute_dtype).astype(f32)

    x = q(obs)
    h1 = jnp.maximum(x @ q(w1) + b1.astype(f32), 0.0)
    h2 = jnp.maximum(q(h1) @ q(w2) + b2.astype(f32), 0.0)
    mean = jnp.tanh(q(h2) @ q(w3) + b3.astype(f32))
    std = jnp.exp(jnp.clip(log_std, LOG_STD_MIN, LOG_STD_MAX))
    return mean, std


if __name__ == "__main__":
    # Small shapes consistent with the module: batch=2, state_dim=16, hidden=32, act_dim=8.
    B, STATE_DIM, HIDDEN_DIM, ACT_DIM = 2, 16, 32, 8
    # TODO(synk): Normal.sample()/act() (max_action clamp) are not part of forward() and are
    #             omitted; the distribution is represented by its (mean, std) parameters.

    key = jax.random.PRNGKey(0)
    k_obs, k_params = jax.random.split(key)
    obs = jax.random.normal(k_obs, (B, STATE_DIM), jnp.float32)
    params = init_params(k_params, STATE_DIM, HIDDEN_DIM, ACT_DIM)

    # --- f32 storage: tight numerical check against the plain f32 reference. --------------
    packed_f32 = prepare_params(params, compute_dtype=jnp.float32)
    mean32, std = gaussian_policy_forward(obs, packed_f32)
    jax.block_until_ready((mean32, std))
    ref_mean, ref_std = reference_forward(obs, params, compute_dtype=jnp.float32)
    assert mean32.shape == (B, ACT_DIM) and std.shape == (ACT_DIM,)
    assert jnp.allclose(mean32, ref_mean, atol=1e-5, rtol=1e-5)
    assert jnp.allclose(std, ref_std, atol=1e-6, rtol=1e-6)

    # --- bf16 storage (production config): f32-accumulated dots, mirrored reference. ------
    packed_bf16 = prepare_params(params, compute_dtype=jnp.bfloat16)
    obs_bf16 = obs.astype(jnp.bfloat16)
    mean16, std16 = gaussian_policy_forward(obs_bf16, packed_bf16)
    jax.block_until_ready((mean16, std16))
    ref16, _ = reference_forward(obs_bf16, params, compute_dtype=jnp.bfloat16)
    assert mean16.shape == (B, ACT_DIM)
    assert jnp.allclose(mean16, ref16, atol=5e-4, rtol=5e-4)
    assert jnp.allclose(std16, ref_std, atol=1e-6, rtol=1e-6)

    print("KERNEL_OK")
</pallas_src>

<mosaic_0001>
module attributes {stable_mosaic.version = 11 : i64} {
  func.func @_policy_kernel(%arg0: i32, %arg1: memref<8x16xf32, #tpu.memory_space<vmem>>, %arg2: memref<16x32xf32, #tpu.memory_space<vmem>>, %arg3: memref<32x32xf32, #tpu.memory_space<vmem>>, %arg4: memref<32x128xf32, #tpu.memory_space<vmem>>, %arg5: memref<1x32xf32, #tpu.memory_space<vmem>>, %arg6: memref<1x32xf32, #tpu.memory_space<vmem>>, %arg7: memref<1x128xf32, #tpu.memory_space<vmem>>, %arg8: memref<8x128xf32, #tpu.memory_space<vmem>>) attributes {dimension_semantics = [#tpu.dimension_semantics<parallel>], iteration_bounds = array<i64: 1>, scalar_prefetch = 0 : i64, scratch_operands = 0 : i64, tpu.core_type = #tpu.core_type<tc>, window_params = [{transform_indices = @transform_0, window_bounds = array<i64: 8, 16>}, {pipeline_mode = #tpu.pipeline_mode<synchronous>, transform_indices = @transform_1, window_bounds = array<i64: 16, 32>}, {pipeline_mode = #tpu.pipeline_mode<synchronous>, transform_indices = @transform_2, window_bounds = array<i64: 32, 32>}, {pipeline_mode = #tpu.pipeline_mode<synchronous>, transform_indices = @transform_3, window_bounds = array<i64: 32, 128>}, {pipeline_mode = #tpu.pipeline_mode<synchronous>, transform_indices = @transform_4, window_bounds = array<i64: 1, 32>}, {pipeline_mode = #tpu.pipeline_mode<synchronous>, transform_indices = @transform_5, window_bounds = array<i64: 1, 32>}, {pipeline_mode = #tpu.pipeline_mode<synchronous>, transform_indices = @transform_6, window_bounds = array<i64: 1, 128>}, {transform_indices = @transform_7, window_bounds = array<i64: 8, 128>}]} {
    %c0 = arith.constant 0 : index
    %c0_0 = arith.constant 0 : index
    %0 = vector.load %arg1[%c0, %c0_0] : memref<8x16xf32, #tpu.memory_space<vmem>>, vector<8x16xf32>
    %c0_1 = arith.constant 0 : index
    %c0_2 = arith.constant 0 : index
    %1 = vector.load %arg2[%c0_1, %c0_2] : memref<16x32xf32, #tpu.memory_space<vmem>>, vector<16x32xf32>
    %cst = arith.constant dense<0.000000e+00> : vector<8x32xf32>
    %2 = tpu.matmul %0, %1, %cst {dimension_numbers = #tpu.dot_dimension_numbers<[1], [0], [0], [1], [0, 0, 1, 1], [], []>} : vector<8x16xf32>, vector<16x32xf32>, vector<8x32xf32> -> vector<8x32xf32>
    %c0_3 = arith.constant 0 : index
    %c0_4 = arith.constant 0 : index
    %3 = vector.load %arg5[%c0_3, %c0_4] : memref<1x32xf32, #tpu.memory_space<vmem>>, vector<1x32xf32>
    %4 = vector.broadcast %3 : vector<1x32xf32> to vector<8x32xf32>
    %5 = arith.addf %2, %4 : vector<8x32xf32>
    %cst_5 = arith.constant 0.000000e+00 : f32
    %6 = vector.broadcast %cst_5 : f32 to vector<8x32xf32>
    %7 = arith.maximumf %5, %6 : vector<8x32xf32>
    %c0_6 = arith.constant 0 : index
    %c0_7 = arith.constant 0 : index
    %8 = vector.load %arg3[%c0_6, %c0_7] : memref<32x32xf32, #tpu.memory_space<vmem>>, vector<32x32xf32>
    %cst_8 = arith.constant dense<0.000000e+00> : vector<8x32xf32>
    %9 = tpu.matmul %7, %8, %cst_8 {dimension_numbers = #tpu.dot_dimension_numbers<[1], [0], [0], [1], [0, 0, 1, 1], [], []>} : vector<8x32xf32>, vector<32x32xf32>, vector<8x32xf32> -> vector<8x32xf32>
    %c0_9 = arith.constant 0 : index
    %c0_10 = arith.constant 0 : index
    %10 = vector.load %arg6[%c0_9, %c0_10] : memref<1x32xf32, #tpu.memory_space<vmem>>, vector<1x32xf32>
    %11 = vector.broadcast %10 : vector<1x32xf32> to vector<8x32xf32>
    %12 = arith.addf %9, %11 : vector<8x32xf32>
    %cst_11 = arith.constant 0.000000e+00 : f32
    %13 = vector.broadcast %cst_11 : f32 to vector<8x32xf32>
    %14 = arith.maximumf %12, %13 : vector<8x32xf32>
    %c0_12 = arith.constant 0 : index
    %c0_13 = arith.constant 0 : index
    %15 = vector.load %arg4[%c0_12, %c0_13] : memref<32x128xf32, #tpu.memory_space<vmem>>, vector<32x128xf32>
    %cst_14 = arith.constant dense<0.000000e+00> : vector<8x128xf32>
    %16 = tpu.matmul %14, %15, %cst_14 {dimension_numbers = #tpu.dot_dimension_numbers<[1], [0], [0], [1], [0, 0, 1, 1], [], []>} : vector<8x32xf32>, vector<32x128xf32>, vector<8x128xf32> -> vector<8x128xf32>
    %c0_15 = arith.constant 0 : index
    %c0_16 = arith.constant 0 : index
    %17 = vector.load %arg7[%c0_15, %c0_16] : memref<1x128xf32, #tpu.memory_space<vmem>>, vector<1x128xf32>
    %18 = vector.broadcast %17 : vector<1x128xf32> to vector<8x128xf32>
    %19 = arith.addf %16, %18 : vector<8x128xf32>
    %20 = math.tanh %19 : vector<8x128xf32>
    %c0_17 = arith.constant 0 : index
    %c0_18 = arith.constant 0 : index
    %21 = vector.load %arg8[%c0_17, %c0_18] : memref<8x128xf32, #tpu.memory_space<vmem>>, vector<8x128xf32>
    tpu.vector_store %arg8[%c0_17, %c0_18], %20 {strides = array<i32>} : memref<8x128xf32, #tpu.memory_space<vmem>>, vector<8x128xf32>,
    return
  }
  func.func @transform_0(%arg0: i32) -> (i32, i32) {
    %c0_i32 = arith.constant 0 : i32
    %c0_i32_0 = arith.constant 0 : i32
    return %arg0, %c0_i32 : i32, i32
  }
  func.func @transform_1(%arg0: i32) -> (i32, i32) {
    %c0_i32 = arith.constant 0 : i32
    %c0_i32_0 = arith.constant 0 : i32
    %c0_i32_1 = arith.constant 0 : i32
    return %c0_i32, %c0_i32_0 : i32, i32
  }
  func.func @transform_2(%arg0: i32) -> (i32, i32) {
    %c0_i32 = arith.constant 0 : i32
    %c0_i32_0 = arith.constant 0 : i32
    %c0_i32_1 = arith.constant 0 : i32
    return %c0_i32, %c0_i32_0 : i32, i32
  }
  func.func @transform_3(%arg0: i32) -> (i32, i32) {
    %c0_i32 = arith.constant 0 : i32
    %c0_i32_0 = arith.constant 0 : i32
    %c0_i32_1 = arith.constant 0 : i32
    return %c0_i32, %c0_i32_0 : i32, i32
  }
  func.func @transform_4(%arg0: i32) -> (i32, i32) {
    %c0_i32 = arith.constant 0 : i32
    %c0_i32_0 = arith.constant 0 : i32
    %c0_i32_1 = arith.constant 0 : i32
    return %c0_i32, %c0_i32_0 : i32, i32
  }
  func.func @transform_5(%arg0: i32) -> (i32, i32) {
    %c0_i32 = arith.constant 0 : i32
    %c0_i32_0 = arith.constant 0 : i32
    %c0_i32_1 = arith.constant 0 : i32
    return %c0_i32, %c0_i32_0 : i32, i32
  }
  func.func @transform_6(%arg0: i32) -> (i32, i32) {
    %c0_i32 = arith.constant 0 : i32
    %c0_i32_0 = arith.constant 0 : i32
    %c0_i32_1 = arith.constant 0 : i32
    return %c0_i32, %c0_i32_0 : i32, i32
  }
  func.func @transform_7(%arg0: i32) -> (i32, i32) {
    %c0_i32 = arith.constant 0 : i32
    %c0_i32_0 = arith.constant 0 : i32
    return %arg0, %c0_i32 : i32, i32
  }
}

</mosaic_0001>

<bundles_post_ra>
// kernel: tpu_custom_call.1
= control target key start
LH: loop header
LB: loop body
LE: loop exit
PB: predicated region body
PF: predicated region fallthrough
CT: control target
= control target key end

     0   :  { %12 = vsyncpa [#allocation3], 0  ;;  %s608_s0 = inlined_call_operand.hbm [shape: f32[8,16], index: 0, kind: input, shape index: {}]   ;;  %s609_s1 = inlined_call_operand.hbm [shape: f32[16,32], index: 1, kind: input, shape index: {}]   ;;  %s610_s2 = inlined_call_operand.hbm [shape: f32[32,32], index: 2, kind: input, shape index: {}]   ;;  %s611_s3 = inlined_call_operand.hbm [shape: f32[32,128], index: 3, kind: input, shape index: {}]   ;;  %s612_s4 = inlined_call_operand.vmem [shape: f32[1,32], index: 4, kind: input, shape index: {}]   ;;  %s613_s5 = inlined_call_operand.vmem [shape: f32[1,32], index: 5, kind: input, shape index: {}]   ;;  %s614_s6 = inlined_call_operand.vmem [shape: f32[1,128], index: 6, kind: input, shape index: {}]   ;;  %s615_s7 = inlined_call_operand.hbm [shape: f32[8,128], index: 7, kind: output, shape index: {}]  }
   0x1   :  { %13 = vsyncpa [#allocation6], 0 }
   0x2   :  { %14 = vsyncpa [#allocation9], 0 }
   0x3   :  { %15 = vsyncpa [#allocation4], 0  ;;  %s521_s24 = smov [#allocation5]  }
   0x4   :  { %s31_s25 = sshll.u32 %s521_s24, 4  ;;  %s32_s25 = int_to_ptr.vmem [resolvable:$true] %s31_s25 }
   0x5   :  { %s421_s26 = scalar_lea.vmem %s32_s25, 256  ;;  %p426_p1 = scmp.lt.s32.totalorder %s32_s25, %s32_s25 }
   0x6   :  { %p422_p0 = scmp.ne.s32.totalorder %s32_s25, %s421_s26  ;;  %p427_p2 = scmp.lt.s32.totalorder %s421_s26, %s421_s26 }
   0x8   :  { %p428_p3 = por %p427_p2, %p426_p1 }
   0xa   :  { %p429_p4 = pnand %p428_p3, %p422_p0 }
   0xc   :  { %432 = shalt.err (!%p429_p4)
}
   0xd   :  { %s522_s27 = smov 128   ;;  %s523_s28 = smov 8  }
   0xe   :  { %37 = dma.hbm_to_vmem [thread:$0]  %s609_s1, 256, %s32_s25, [#allocation6], %s522_s27, %s522_s27, %s523_s28  }
   0xf   :  { %s524_s8 = smov [#allocation2]   ;;  %s525_s10 = smov [#allocation7]  }
  0x10   :  { %s22_s9 = sshll.u32 %s524_s8, 4  ;;  %s43_s11 = sshll.u32 %s525_s10, 4  ;;  %s23_s9 = int_to_ptr.vmem [resolvable:$true] %s22_s9  ;;  %s44_s11 = int_to_ptr.vmem [resolvable:$true] %s43_s11 }
  0x11   :  { %s441_s12 = scalar_lea.vmem %s23_s9, 128  ;;  %p446_p6 = scmp.lt.s32.totalorder %s23_s9, %s23_s9 }
  0x12   :  { %p442_p5 = scmp.ne.s32.totalorder %s23_s9, %s441_s12  ;;  %p447_p7 = scmp.lt.s32.totalorder %s441_s12, %s441_s12 }
  0x14   :  { %p448_p8 = por %p447_p7, %p446_p6 }
  0x16   :  { %p449_p9 = pnand %p448_p8, %p442_p5 }
  0x18   :  { %452 = shalt.err (!%p449_p9)
}
  0x19   :  { %25 = dma.hbm_to_vmem [thread:$0]  %s608_s0, 128, %s23_s9, [#allocation3]  }
  0x1a   :  { %s461_s15 = scalar_lea.vmem %s44_s11, 512  ;;  %p466_p11 = scmp.lt.s32.totalorder %s44_s11, %s44_s11 }
  0x1b   :  { %p462_p10 = scmp.ne.s32.totalorder %s44_s11, %s461_s15  ;;  %p467_p12 = scmp.lt.s32.totalorder %s461_s15, %s461_s15 }
  0x1d   :  { %p468_p13 = por %p467_p12, %p466_p11 }
  0x1f   :  { %p469_p0 = pnand %p468_p13, %p462_p10 }
  0x21   :  { %472 = shalt.err (!%p469_p0)
}
  0x22   :  { %49 = dma.hbm_to_vmem [thread:$0]  %s610_s2, 512, %s44_s11, [#allocation6], %s522_s27, %s522_s27, %s523_s28  }
  0x23   :  { %s526_s17 = smov [#allocation8]  }
  0x24   :  { %s55_s18 = sshll.u32 %s526_s17, 4  ;;  %s56_s18 = int_to_ptr.vmem [resolvable:$true] %s55_s18 }
  0x25   :  { %s481_s19 = scalar_lea.vmem %s56_s18, 512  ;;  %p486_p2 = scmp.lt.s32.totalorder %s56_s18, %s56_s18 }
  0x26   :  { %p482_p1 = scmp.ne.s32.totalorder %s56_s18, %s481_s19  ;;  %p487_p3 = scmp.lt.s32.totalorder %s481_s19, %s481_s19 }
  0x28   :  { %p488_p4 = por %p487_p3, %p486_p2 }
  0x2a   :  { %p489_p5 = pnand %p488_p4, %p482_p1 }
  0x2c   :  { %492 = shalt.err (!%p489_p5)
}
  0x2d   :  { %61 = dma.hbm_to_vmem [thread:$0]  %s611_s3, 512, %s56_s18, [#allocation9], %s522_s27, %s522_s27, %s523_s28  }
  0x2e   :  { %513 = dma.done.wait [#allocation3], 128  }
  0x2f   :  { %514 = vsyncadd [#allocation3], 4294967168 }
  0x30   :  { %515 = dma.done.wait [#allocation6], 768  }
  0x31   :  { %516 = vsyncadd [#allocation6], 4294966528 }
  0x32   :  { %517 = dma.done.wait [#allocation9], 512  }
  0x33   :  { %518 = vsyncadd [#allocation9], 4294966784  ;;  %v527_v0 = vmov 0.0   ;;  %vm528_vm0 = vmmov 0   ;;  %v82_v1 = vld [vmem:[#allocation5 + $0x8] sm:$0xff]  ;;  %v81_v2 = vld [vmem:[#allocation5] sm:$0xff] }
  0x34   :  { %373 = vmatprep.subr.mxu0 %v527_v0  ;;  %377 = vmatprep.mubr.msk.f32.mxu0 %vm528_vm0, %v527_v0  ;;  %v80_v3 = vld [vmem:[#allocation2] sm:$0xff]  ;;  %vm90_vm1 = vcmask 130048   ;;  %v168_v4 = vld [vmem:[#allocation7 + $0x18] sm:$0xff]  ;;  %v167_v5 = vld [vmem:[#allocation7 + $0x10] sm:$0xff]  ;;  %vm176_vm2 = vcmask 261120   ;;  %s529_s24 = smov [#allocation10]  }
  0x35   :  { %380 = vmatprep.subr.mxu1 %v527_v0  ;;  %388 = vmatprep.mubr.msk.f32.mxu1 %vm528_vm0, %v527_v0  ;;  %v166_v6 = vld [vmem:[#allocation7 + $0x8] sm:$0xff]  ;;  %v165_v7 = vld [vmem:[#allocation7] sm:$0xff]  ;;  %v254_v8 = vld [vmem:[#allocation8 + $0x18] sm:$0xff]  ;;  %s343_s25 = sshll.u32 %s529_s24, 4  ;;  %s344_s25 = int_to_ptr.vmem [resolvable:$true] %s343_s25 }
  0x36   :  { %374 = vmatpush3.msra.mxu0 %v82_v1  ;;  %381 = vmatpush3.msra.mxu1 %v168_v4  ;;  %v354_v9 = vld [vmem:[%s612_s4] ss:$0 sm:$0xff]  ;;  %v253_v14 = vld [vmem:[#allocation8 + $0x10] sm:$0xff]  ;;  %v251_v16 = vld [vmem:[#allocation8] sm:$0xff]  ;;  %p498_p7 = scmp.lt.s32.totalorder %s344_s25, %s344_s25 }
  0x37   :  { %375 = vmatprep.subr.mxu0 %v527_v0  ;;  %382 = vmatprep.subr.mxu1 %v527_v0  ;;  %v252_v15 = vld [vmem:[#allocation8 + $0x8] sm:$0xff] }
  0x38   :  { %376 = vmatpush3.msra.mxu0 %v81_v2  ;;  %383 = vmatpush3.msra.mxu1 %v167_v5  ;;  %v356_v17 = vld [vmem:[%s613_s5] ss:$0 sm:$0xff]  ;;  %s493_s5 = scalar_lea.vmem %s344_s25, 128 }
  0x39   :  { %378 = vmatmul.mubr.msk.f32.vlgmr.msra.gmra.mxu0 %vm90_vm1, %v80_v3  ;;  %391 = vmatprep.subr.mxu0 %v527_v0  ;;  %v358_v22 = vld [vmem:[%s614_s6] ss:$0 sm:$0xff]  ;;  %p494_p6 = scmp.ne.s32.totalorder %s344_s25, %s493_s5  ;;  %p499_p8 = scmp.lt.s32.totalorder %s493_s5, %s493_s5 }
  0x3a   :  { %399 = vmatprep.mubr.msk.f32.mxu0 %vm528_vm0, %v527_v0  ;;  %384 = vmatprep.subr.mxu1 %v527_v0 }
  0x3b   :  { %385 = vmatpush3.msra.mxu1 %v166_v6  ;;  %392 = vmatpush3.msra.mxu0 %v254_v8  ;;  %p500_p9 = por %p499_p8, %p498_p7 }
  0x3c   :  { %386 = vmatprep.subr.mxu1 %v527_v0  ;;  %393 = vmatprep.subr.mxu0 %v527_v0 }
  0x3d   :  { %387 = vmatpush3.msra.mxu1 %v165_v7  ;;  %394 = vmatpush3.msra.mxu0 %v253_v14  ;;  %p501_p10 = pnand %p500_p9, %p494_p6 }
  0x3e   :  { %395 = vmatprep.subr.mxu0 %v527_v0 }
  0x3f   :  { %396 = vmatpush3.msra.mxu0 %v252_v15 }
  0x40   :  { %397 = vmatprep.subr.mxu0 %v527_v0 }
  0x41   :  { %398 = vmatpush3.msra.mxu0 %v251_v16 }
  0xf9   :  { %v160_v10 = vpop.f32.mrf.mxu0 }
  0xfa   :  { %v161_v11 = vadd.f32 %v354_v9, %v160_v10 }
  0xfb   :  { %v379_v12 = vpop.f32.mrf.mxu0 }
  0xfc   :  { %v164_v13 = vmax.f32 %v161_v11, 0.0 }
  0xfe   :  { %389 = vmatmul.mubr.msk.f32.vlgmr.msra.gmra.mxu1 %vm176_vm2, %v164_v13 }
 0x1be   :  { %v246_v18 = vpop.f32.mrf.mxu1 }
 0x1bf   :  { %v247_v19 = vadd.f32 %v356_v17, %v246_v18 }
 0x1c0   :  { %v390_v20 = vpop.f32.mrf.mxu1 }
 0x1c1   :  { %v250_v21 = vmax.f32 %v247_v19, 0.0 }
 0x1c3   :  { %400 = vmatmul.mubr.msk.f32.vlgmr.msra.gmra.mxu0 %vm176_vm2, %v250_v21 }
 0x283   :  { %v331_v23 = vpop.f32.mrf.mxu0 }
 0x284   :  { %v332_v24 = vadd.f32 %v358_v22, %v331_v23 }
 0x285   :  { %v401_v25 = vpop.f32.mrf.mxu0 }
 0x286   :  { %411 = vtanh.f32 %v332_v24 }
 0x293   :  { %v412_v26 = vpop.eup %411 }
 0x294   :  { %336 = vst [vmem:[#allocation10] sm:$0xff] %v412_v26 }
 0x295   :  { %504 = shalt.err (!%p501_p10)
}
 0x296   :  { %346 = dma.vmem_to_hbm [thread:$0]  %s344_s25, 128, %s615_s7, [#allocation4]  }
 0x297   :  { %519 = dma.done.wait [#allocation4], 128  }
 0x298   :  { %520 = vsyncadd [#allocation4], 4294967168 }
 0x299   :  { %350 = vsyncpa [#allocation3], 1 }
 0x29a   :  { %351 = vsyncpa [#allocation6], 1 }
 0x29b   :  { %352 = vsyncpa [#allocation9], 1 }
 0x29c   :  { %353 = vsyncpa [#allocation4], 1 }

</bundles_post_ra>
